<compile_context>
chip_gen: v7x
topology: tpu7x:2x2x1
jax: 0.10.0
libtpu: 0.0.40
codegen_flags: <defaults>
</compile_context>

<pallas_src>
import functools

import jax
import jax.numpy as jnp
import numpy as np
from jax.experimental import pallas as pl
from jax.experimental.pallas import tpu as pltpu


# --------------------------------------------------------------------------- #
# Kernel
# --------------------------------------------------------------------------- #
def _double_conv_kernel(x_ref, w1_ref, b1_ref, w2_ref, b2_ref, o_ref, y_ref, *,
                        TH):
    """One (batch, row-tile) grid step of the fused double conv.

    x_ref : (H+4, W*Cin)        bf16, H zero-padded by 2 on each side
    w1_ref: (3*W*Cin, W*Cmid)   bf16, dy-stacked W-banded, BN1 scale folded
    b1_ref: (1, W*Cmid)         f32, lane-packed BN1 bias
    w2_ref: (3*W*Cmid, W*Cout)  bf16, dy-stacked W-banded, BN2 scale folded
    b2_ref: (1, W*Cout)         f32, lane-packed BN2 bias
    o_ref : (TH, W*Cout)        bf16, output row tile (lane-dense)
    y_ref : (TH+2, W*Cmid)      bf16 VMEM scratch, conv1 output incl. 1-row halo
    """
    h = pl.program_id(1)
    t0 = pl.multiple_of(h * TH, TH)
    wcmid = y_ref.shape[-1]

    # conv1 (+ folded BN1 scale) over TH+2 rows: load the row window once and
    # build a dy-stacked LHS so the conv is a single deep-K (3*W*Cin) matmul.
    xwin = x_ref[pl.ds(t0, TH + 4), :]
    lhs1 = jnp.concatenate(
        [xwin[0:TH + 2], xwin[1:TH + 3], xwin[2:TH + 4]], axis=1)
    acc1 = jnp.dot(lhs1, w1_ref[...], preferred_element_type=jnp.float32)
    y_ref[...] = jnp.maximum(acc1 + b1_ref[...], 0.0).astype(y_ref.dtype)

    # conv2 zero-pads conv1's output in H: halo rows that fall outside the
    # image must be exactly zero.  Only boundary row tiles pay for it.
    @pl.when(h == 0)
    def _():
        y_ref[0:1, :] = jnp.zeros((1, wcmid), y_ref.dtype)

    @pl.when(h == pl.num_programs(1) - 1)
    def _():
        y_ref[TH + 1:TH + 2, :] = jnp.zeros((1, wcmid), y_ref.dtype)

    # conv2 (+ folded BN2 scale): again one deep-K (3*W*Cmid) matmul.
    y = y_ref[...]
    lhs2 = jnp.concatenate([y[0:TH], y[1:TH + 1], y[2:TH + 2]], axis=1)
    acc2 = jnp.dot(lhs2, w2_ref[...], preferred_element_type=jnp.float32)
    o_ref[...] = jnp.maximum(acc2 + b2_ref[...], 0.0).astype(o_ref.dtype)


# --------------------------------------------------------------------------- #
# One-time (model-load) weight preparation — hoisted out of the per-call path
# --------------------------------------------------------------------------- #
def _banded_weights(wt, W):
    """wt: (3, 3, Cin, Cout) taps (dy, dx, ci, co) -> (3, W*Cin, W*Cout).

    For each dy, a block-Toeplitz matrix implementing the dx direction of a
    3x3 / pad=1 conv on a lane-packed (.., W*Cin) row; W-boundary zero padding
    is encoded by the band (out-of-range taps are absent)."""
    _, _, cin, cout = wt.shape
    wi = jnp.arange(W)[:, None]
    wo = jnp.arange(W)[None, :]
    dx = wi - wo + 1                                    # tap index, valid in [0, 2]
    valid = (dx >= 0) & (dx <= 2)
    blk = wt[:, jnp.clip(dx, 0, 2)]                     # (3, W, W, Cin, Cout)
    blk = blk * valid[None, :, :, None, None].astype(wt.dtype)
    blk = jnp.transpose(blk, (0, 1, 3, 2, 4))           # (3, W, Cin, W, Cout)
    return blk.reshape(3, W * cin, W * cout)


def prepare_double_conv_params(w1_oihw, g1, be1, m1, v1,
                               w2_oihw, g2, be2, m2, v2, W, eps=1e-5):
    """Fold eval-mode BN into the conv weights/bias and build the dy-stacked
    W-banded bf16 weights + lane-packed f32 biases.  Call ONCE at model load."""
    Cin = w1_oihw.shape[1]
    Cmid = w1_oihw.shape[0]
    Cout = w2_oihw.shape[0]

    s1 = (g1 / jnp.sqrt(v1 + eps)).astype(jnp.float32)
    b1 = be1.astype(jnp.float32) - m1.astype(jnp.float32) * s1
    s2 = (g2 / jnp.sqrt(v2 + eps)).astype(jnp.float32)
    b2 = be2.astype(jnp.float32) - m2.astype(jnp.float32) * s2

    wt1 = jnp.transpose(w1_oihw, (2, 3, 1, 0)).astype(jnp.float32) * s1
    wt2 = jnp.transpose(w2_oihw, (2, 3, 1, 0)).astype(jnp.float32) * s2
    w1s = _banded_weights(wt1, W).reshape(3 * W * Cin, W * Cmid).astype(jnp.bfloat16)
    w2s = _banded_weights(wt2, W).reshape(3 * W * Cmid, W * Cout).astype(jnp.bfloat16)
    b1p = jnp.tile(b1, W).reshape(1, W * Cmid)
    b2p = jnp.tile(b2, W).reshape(1, W * Cout)
    return w1s, b1p, w2s, b2p


# --------------------------------------------------------------------------- #
# Tile selection (generation-aware)
# --------------------------------------------------------------------------- #
def _tensorcores_per_chip():
    try:
        kind = jax.devices()[0].device_kind.lower()
    except Exception:
        return 1
    # v7x has 2 TensorCores per chip; v5e/v6e have 1.
    return 2 if "v7" in kind else 1


def _pick_tile_h(H, N, wcin, wcmid, wcout):
    """Prefer TH = H (one big-M matmul per batch element, no halo recompute,
    no extra grid-step overhead; the batch axis supplies parallel work).
    Split H only when (a) N == 1 on a 2-TC chip so both TensorCores get a grid
    unit, or (b) a single tile would exceed the VMEM budget."""
    def vmem_bytes(th):
        by = 2 * 2 * (H + 4) * wcin               # padded image block (bf16, 2 bufs)
        by += 2 * (th + 2) * 3 * wcin             # stacked conv1 LHS (bf16)
        by += 4 * (th + 2) * wcmid                # conv1 f32 acc
        by += 2 * (th + 2) * wcmid                # conv1 output scratch (bf16)
        by += 2 * th * 3 * wcmid                  # stacked conv2 LHS (bf16)
        by += 4 * th * wcout                      # conv2 f32 acc
        by += 2 * 2 * th * wcout                  # output block (bf16, 2 bufs)
        by += 2 * 2 * (3 * wcin * wcmid + 3 * wcmid * wcout)   # weights (2 bufs)
        return by

    budget = 24 * 1024 * 1024                     # headroom under 32 MiB scoped limit
    cands = [th for th in range(8, H, 8) if H % th == 0]
    want_split = (N == 1 and _tensorcores_per_chip() >= 2 and bool(cands))
    if not want_split and vmem_bytes(H) <= budget:
        return H
    for th in sorted(cands, reverse=True):
        if vmem_bytes(th) <= budget:
            return th
    return min(cands) if cands else H


# --------------------------------------------------------------------------- #
# Packed-layout wrapper (what consecutive DoubleConv layers should call)
# --------------------------------------------------------------------------- #
@jax.jit
def double_conv_packed(x_packed, w1s, b1p, w2s, b2p):
    """x_packed: (N, H, W*Cin) bf16 lane-packed activations.
    Returns (N, H, W*Cout) bf16 lane-packed activations."""
    N, H, WCin = x_packed.shape
    WCmid = w1s.shape[1]
    WCout = w2s.shape[1]
    TH = _pick_tile_h(H, N, WCin, WCmid, WCout)
    nH = H // TH

    xp = jnp.pad(x_packed.astype(jnp.bfloat16), ((0, 0), (2, 2), (0, 0)))

    kernel = functools.partial(_double_conv_kernel, TH=TH)
    return pl.pallas_call(
        kernel,
        out_shape=jax.ShapeDtypeStruct((N, H, WCout), jnp.bfloat16),
        grid_spec=pltpu.PrefetchScalarGridSpec(
            num_scalar_prefetch=0,
            grid=(N, nH),
            in_specs=[
                # Per-batch padded image; with the default TH == H this IS the
                # per-tile block (double-buffered across the batch axis).
                pl.BlockSpec((None, H + 4, WCin), lambda n, h: (n, 0, 0)),
                pl.BlockSpec((3 * WCin, WCmid), lambda n, h: (0, 0)),
                pl.BlockSpec((1, WCmid), lambda n, h: (0, 0)),
                pl.BlockSpec((3 * WCmid, WCout), lambda n, h: (0, 0)),
                pl.BlockSpec((1, WCout), lambda n, h: (0, 0)),
            ],
            out_specs=pl.BlockSpec((None, TH, WCout), lambda n, h: (n, h, 0)),
            scratch_shapes=[pltpu.VMEM((TH + 2, WCmid), jnp.bfloat16)],
        ),
        compiler_params=pltpu.CompilerParams(
            dimension_semantics=("parallel", "parallel"),
            vmem_limit_bytes=32 * 1024 * 1024,
        ),
    )(xp, w1s, b1p, w2s, b2p)


def pack_to_lanes(x_nchw):
    """NCHW -> lane-packed (N, H, W*C) bf16."""
    N, C, H, W = x_nchw.shape
    return jnp.transpose(x_nchw, (0, 2, 3, 1)).reshape(N, H, W * C).astype(jnp.bfloat16)


def unpack_from_lanes(x_packed, C):
    """lane-packed (N, H, W*C) -> NCHW."""
    N, H, WC = x_packed.shape
    x = x_packed.reshape(N, H, WC // C, C)
    return jnp.transpose(x, (0, 3, 1, 2))


def double_conv_nchw(x_nchw, params):
    """Convenience NCHW wrapper (pack -> kernel -> unpack)."""
    w1s, b1p, w2s, b2p = params
    W = x_nchw.shape[3]
    Cout = w2s.shape[1] // W
    out_packed = double_conv_packed(pack_to_lanes(x_nchw), w1s, b1p, w2s, b2p)
    return unpack_from_lanes(out_packed, Cout)


# --------------------------------------------------------------------------- #
# Pure-JAX reference (eval-mode BatchNorm)
# --------------------------------------------------------------------------- #
def _ref_double_conv(x, w1, g1, be1, m1, v1, w2, g2, be2, m2, v2, eps=1e-5):
    def conv(xx, ww):
        return jax.lax.conv_general_dilated(
            xx, ww, window_strides=(1, 1), padding=((1, 1), (1, 1)),
            dimension_numbers=("NCHW", "OIHW", "NCHW"),
            precision=jax.lax.Precision.HIGHEST)

    def bn(xx, g, b, m, v):
        g, b, m, v = [a[None, :, None, None] for a in (g, b, m, v)]
        return (xx - m) / jnp.sqrt(v + eps) * g + b

    y = jnp.maximum(bn(conv(x, w1), g1, be1, m1, v1), 0.0)
    z = jnp.maximum(bn(conv(y, w2), g2, be2, m2, v2), 0.0)
    return z


if __name__ == "__main__":
    N, Cin, H, W = 2, 4, 16, 16
    Cmid = Cout = 8          # DoubleConv(in_channels=4, out_channels=8)
    eps = 1e-5

    key = jax.random.PRNGKey(0)
    keys = jax.random.split(key, 11)
    x = jax.random.normal(keys[0], (N, Cin, H, W), jnp.float32)

    # conv weights (PyTorch OIHW), bias=False
    w1 = jax.random.normal(keys[1], (Cmid, Cin, 3, 3), jnp.float32) * 0.1
    w2 = jax.random.normal(keys[2], (Cout, Cmid, 3, 3), jnp.float32) * 0.1

    # BatchNorm params (inference-mode running stats)
    g1 = 1.0 + 0.1 * jax.random.normal(keys[3], (Cmid,), jnp.float32)
    be1 = 0.1 * jax.random.normal(keys[4], (Cmid,), jnp.float32)
    m1 = 0.05 * jax.random.normal(keys[5], (Cmid,), jnp.float32)
    v1 = 1.0 + 0.1 * jnp.abs(jax.random.normal(keys[6], (Cmid,), jnp.float32))
    g2 = 1.0 + 0.1 * jax.random.normal(keys[7], (Cout,), jnp.float32)
    be2 = 0.1 * jax.random.normal(keys[8], (Cout,), jnp.float32)
    m2 = 0.05 * jax.random.normal(keys[9], (Cout,), jnp.float32)
    v2 = 1.0 + 0.1 * jnp.abs(jax.random.normal(keys[10], (Cout,), jnp.float32))

    # One-time weight/bias preparation (model-load time, not per call).
    params = prepare_double_conv_params(w1, g1, be1, m1, v1,
                                        w2, g2, be2, m2, v2, W, eps)
    params = jax.block_until_ready(params)

    out = double_conv_nchw(x, params)
    out = jax.block_until_ready(out)

    ref = _ref_double_conv(x, w1, g1, be1, m1, v1, w2, g2, be2, m2, v2, eps)
    # bf16 activations/weights on the MXU and a bf16 output stream (f32
    # accumulation) -> looser tolerance than a pure-f32 implementation.
    np.testing.assert_allclose(np.asarray(out.astype(jnp.float32)),
                               np.asarray(ref), rtol=2.5e-2, atol=2.5e-2)
    assert out.shape == (N, Cout, H, W)
    print("KERNEL_OK")
</pallas_src>

<mosaic_0001>
module attributes {stable_mosaic.version = 11 : i64} {
  func.func @_double_conv_kernel(%arg0: i32, %arg1: i32, %arg2: memref<1x20x64xbf16, #tpu.memory_space<vmem>>, %arg3: memref<192x128xbf16, #tpu.memory_space<vmem>>, %arg4: memref<1x128xf32, #tpu.memory_space<vmem>>, %arg5: memref<384x128xbf16, #tpu.memory_space<vmem>>, %arg6: memref<1x128xf32, #tpu.memory_space<vmem>>, %arg7: memref<1x16x128xbf16, #tpu.memory_space<vmem>>, %arg8: memref<18x128xbf16, #tpu.memory_space<vmem>>) attributes {dimension_semantics = [#tpu.dimension_semantics<parallel>, #tpu.dimension_semantics<parallel>], iteration_bounds = array<i64: 2, 1>, scalar_prefetch = 0 : i64, scratch_operands = 1 : i64, tpu.core_type = #tpu.core_type<tc>, window_params = [{transform_indices = @transform_0, window_bounds = array<i64: 1, 20, 64>}, {pipeline_mode = #tpu.pipeline_mode<synchronous>, transform_indices = @transform_1, window_bounds = array<i64: 192, 128>}, {pipeline_mode = #tpu.pipeline_mode<synchronous>, transform_indices = @transform_2, window_bounds = array<i64: 1, 128>}, {pipeline_mode = #tpu.pipeline_mode<synchronous>, transform_indices = @transform_3, window_bounds = array<i64: 384, 128>}, {pipeline_mode = #tpu.pipeline_mode<synchronous>, transform_indices = @transform_4, window_bounds = array<i64: 1, 128>}, {transform_indices = @transform_5, window_bounds = array<i64: 1, 16, 128>}]} {
    %c16_i32 = arith.constant 16 : i32
    %0 = arith.muli %arg1, %c16_i32 : i32
    %1 = tpu.assume_multiple %0, 16 : i32
    %c0 = arith.constant 0 : index
    %2 = arith.index_cast %1 : i32 to index
    %c0_0 = arith.constant 0 : index
    %3 = vector.load %arg2[%c0, %2, %c0_0] : memref<1x20x64xbf16, #tpu.memory_space<vmem>>, vector<1x20x64xbf16>
    %4 = vector.shape_cast %3 : vector<1x20x64xbf16> to vector<20x64xbf16>
    %5 = vector.extract_strided_slice %4 {offsets = [0, 0], sizes = [18, 64], strides = [1, 1]} : vector<20x64xbf16> to vector<18x64xbf16>
    %6 = vector.extract_strided_slice %4 {offsets = [1, 0], sizes = [18, 64], strides = [1, 1]} : vector<20x64xbf16> to vector<18x64xbf16>
    %7 = vector.extract_strided_slice %4 {offsets = [2, 0], sizes = [18, 64], strides = [1, 1]} : vector<20x64xbf16> to vector<18x64xbf16>
    %8 = tpu.concatenate %5, %6, %7 in 1 : vector<18x64xbf16>, vector<18x64xbf16>, vector<18x64xbf16> -> vector<18x192xbf16>
    %c0_1 = arith.constant 0 : index
    %c0_2 = arith.constant 0 : index
    %9 = vector.load %arg3[%c0_1, %c0_2] : memref<192x128xbf16, #tpu.memory_space<vmem>>, vector<192x128xbf16>
    %cst = arith.constant dense<0.000000e+00> : vector<18x128xf32>
    %10 = tpu.matmul %8, %9, %cst {dimension_numbers = #tpu.dot_dimension_numbers<[1], [0], [0], [1], [0, 0, 1, 1], [], []>} : vector<18x192xbf16>, vector<192x128xbf16>, vector<18x128xf32> -> vector<18x128xf32>
    %c0_3 = arith.constant 0 : index
    %c0_4 = arith.constant 0 : index
    %11 = vector.load %arg4[%c0_3, %c0_4] : memref<1x128xf32, #tpu.memory_space<vmem>>, vector<1x128xf32>
    %12 = vector.broadcast %11 : vector<1x128xf32> to vector<18x128xf32>
    %13 = arith.addf %10, %12 : vector<18x128xf32>
    %cst_5 = arith.constant 0.000000e+00 : f32
    %14 = vector.broadcast %cst_5 : f32 to vector<18x128xf32>
    %15 = arith.maximumf %13, %14 : vector<18x128xf32>
    %16 = arith.truncf %15 : vector<18x128xf32> to vector<18x128xbf16>
    %c0_6 = arith.constant 0 : index
    %c0_7 = arith.constant 0 : index
    %17 = vector.load %arg8[%c0_6, %c0_7] : memref<18x128xbf16, #tpu.memory_space<vmem>>, vector<18x128xbf16>
    tpu.vector_store %arg8[%c0_6, %c0_7], %16 {strides = array<i32>} : memref<18x128xbf16, #tpu.memory_space<vmem>>, vector<18x128xbf16>,
    %c0_i32 = arith.constant 0 : i32
    %18 = arith.cmpi eq, %arg1, %c0_i32 : i32
    %19 = arith.extui %18 : i1 to i32
    %c0_i32_8 = arith.constant 0 : i32
    %20 = arith.cmpi ne, %19, %c0_i32_8 : i32
    scf.if %20 {
      %cst_22 = arith.constant 0.000000e+00 : bf16
      %40 = vector.broadcast %cst_22 : bf16 to vector<1x128xbf16>
      %c0_23 = arith.constant 0 : index
      %c0_24 = arith.constant 0 : index
      %41 = vector.load %arg8[%c0_23, %c0_24] : memref<18x128xbf16, #tpu.memory_space<vmem>>, vector<1x128xbf16>
      tpu.vector_store %arg8[%c0_23, %c0_24], %40 {strides = array<i32>} : memref<18x128xbf16, #tpu.memory_space<vmem>>, vector<1x128xbf16>,
    } else {
    }
    %c0_i32_9 = arith.constant 0 : i32
    %21 = arith.cmpi eq, %arg1, %c0_i32_9 : i32
    %22 = arith.extui %21 : i1 to i32
    %c0_i32_10 = arith.constant 0 : i32
    %23 = arith.cmpi ne, %22, %c0_i32_10 : i32
    scf.if %23 {
      %cst_22 = arith.constant 0.000000e+00 : bf16
      %40 = vector.broadcast %cst_22 : bf16 to vector<1x128xbf16>
      %c17 = arith.constant 17 : index
      %c0_23 = arith.constant 0 : index
      %41 = vector.load %arg8[%c17, %c0_23] : memref<18x128xbf16, #tpu.memory_space<vmem>>, vector<1x128xbf16>
      tpu.vector_store %arg8[%c17, %c0_23], %40 {strides = array<i32>} : memref<18x128xbf16, #tpu.memory_space<vmem>>, vector<1x128xbf16>,
    } else {
    }
    %c0_11 = arith.constant 0 : index
    %c0_12 = arith.constant 0 : index
    %24 = vector.load %arg8[%c0_11, %c0_12] : memref<18x128xbf16, #tpu.memory_space<vmem>>, vector<18x128xbf16>
    %25 = vector.extract_strided_slice %24 {offsets = [0, 0], sizes = [16, 128], strides = [1, 1]} : vector<18x128xbf16> to vector<16x128xbf16>
    %26 = vector.extract_strided_slice %24 {offsets = [1, 0], sizes = [16, 128], strides = [1, 1]} : vector<18x128xbf16> to vector<16x128xbf16>
    %27 = vector.extract_strided_slice %24 {offsets = [2, 0], sizes = [16, 128], strides = [1, 1]} : vector<18x128xbf16> to vector<16x128xbf16>
    %28 = tpu.concatenate %25, %26, %27 in 1 : vector<16x128xbf16>, vector<16x128xbf16>, vector<16x128xbf16> -> vector<16x384xbf16>
    %c0_13 = arith.constant 0 : index
    %c0_14 = arith.constant 0 : index
    %29 = vector.load %arg5[%c0_13, %c0_14] : memref<384x128xbf16, #tpu.memory_space<vmem>>, vector<384x128xbf16>
    %cst_15 = arith.constant dense<0.000000e+00> : vector<16x128xf32>
    %30 = tpu.matmul %28, %29, %cst_15 {dimension_numbers = #tpu.dot_dimension_numbers<[1], [0], [0], [1], [0, 0, 1, 1], [], []>} : vector<16x384xbf16>, vector<384x128xbf16>, vector<16x128xf32> -> vector<16x128xf32>
    %c0_16 = arith.constant 0 : index
    %c0_17 = arith.constant 0 : index
    %31 = vector.load %arg6[%c0_16, %c0_17] : memref<1x128xf32, #tpu.memory_space<vmem>>, vector<1x128xf32>
    %32 = vector.broadcast %31 : vector<1x128xf32> to vector<16x128xf32>
    %33 = arith.addf %30, %32 : vector<16x128xf32>
    %cst_18 = arith.constant 0.000000e+00 : f32
    %34 = vector.broadcast %cst_18 : f32 to vector<16x128xf32>
    %35 = arith.maximumf %33, %34 : vector<16x128xf32>
    %36 = arith.truncf %35 : vector<16x128xf32> to vector<16x128xbf16>
    %c0_19 = arith.constant 0 : index
    %c0_20 = arith.constant 0 : index
    %c0_21 = arith.constant 0 : index
    %37 = vector.load %arg7[%c0_19, %c0_20, %c0_21] : memref<1x16x128xbf16, #tpu.memory_space<vmem>>, vector<1x16x128xbf16>
    %38 = vector.shape_cast %37 : vector<1x16x128xbf16> to vector<16x128xbf16>
    %39 = vector.shape_cast %36 : vector<16x128xbf16> to vector<1x16x128xbf16>
    tpu.vector_store %arg7[%c0_19, %c0_20, %c0_21], %39 {strides = array<i32>} : memref<1x16x128xbf16, #tpu.memory_space<vmem>>, vector<1x16x128xbf16>,
    return
  }
  func.func @transform_0(%arg0: i32, %arg1: i32) -> (i32, i32, i32) {
    %c0_i32 = arith.constant 0 : i32
    %c0_i32_0 = arith.constant 0 : i32
    %c0_i32_1 = arith.constant 0 : i32
    return %arg0, %c0_i32, %c0_i32_0 : i32, i32, i32
  }
  func.func @transform_1(%arg0: i32, %arg1: i32) -> (i32, i32) {
    %c0_i32 = arith.constant 0 : i32
    %c0_i32_0 = arith.constant 0 : i32
    %c0_i32_1 = arith.constant 0 : i32
    return %c0_i32, %c0_i32_0 : i32, i32
  }
  func.func @transform_2(%arg0: i32, %arg1: i32) -> (i32, i32) {
    %c0_i32 = arith.constant 0 : i32
    %c0_i32_0 = arith.constant 0 : i32
    %c0_i32_1 = arith.constant 0 : i32
    return %c0_i32, %c0_i32_0 : i32, i32
  }
  func.func @transform_3(%arg0: i32, %arg1: i32) -> (i32, i32) {
    %c0_i32 = arith.constant 0 : i32
    %c0_i32_0 = arith.constant 0 : i32
    %c0_i32_1 = arith.constant 0 : i32
    return %c0_i32, %c0_i32_0 : i32, i32
  }
  func.func @transform_4(%arg0: i32, %arg1: i32) -> (i32, i32) {
    %c0_i32 = arith.constant 0 : i32
    %c0_i32_0 = arith.constant 0 : i32
    %c0_i32_1 = arith.constant 0 : i32
    return %c0_i32, %c0_i32_0 : i32, i32
  }
  func.func @transform_5(%arg0: i32, %arg1: i32) -> (i32, i32, i32) {
    %c0_i32 = arith.constant 0 : i32
    %c0_i32_0 = arith.constant 0 : i32
    return %arg0, %arg1, %c0_i32 : i32, i32, i32
  }
}

</mosaic_0001>

<bundles_post_ra>
// kernel: double_conv_packed.1
= control target key start
LH: loop header
LB: loop body
LE: loop exit
PB: predicated region body
PF: predicated region fallthrough
CT: control target
= control target key end

     0   :  { %10 = vsyncpa [#allocation4], 0  ;;  %s1599_s0 = inlined_call_operand.vmem [shape: bf16[2,20,64], index: 0, kind: input, shape index: {}]   ;;  %s1600_s1 = inlined_call_operand.hbm [shape: bf16[192,128], index: 1, kind: input, shape index: {}]   ;;  %s1601_s2 = inlined_call_operand.vmem [shape: f32[1,128], index: 2, kind: input, shape index: {}]   ;;  %s1602_s3 = inlined_call_operand.hbm [shape: bf16[384,128], index: 3, kind: input, shape index: {}]   ;;  %s1603_s4 = inlined_call_operand.vmem [shape: f32[1,128], index: 4, kind: input, shape index: {}]   ;;  %s1604_s5 = inlined_call_operand.hbm [shape: bf16[2,16,128], index: 5, kind: output, shape index: {}]  }
   0x1   :  { %11 = vsyncpa [#allocation7], 0 }
   0x2   :  { %12 = vsyncpa [#allocation5], 0 }
   0x3   :  { %14 = vsyncpa [#allocation5 + $0x1], 0  ;;  %s1382_s18 = smov 0   ;;  %s1384_s19 = smov 0  }
   0x4   :  { %s1386_s20 = smov 0   ;;  %s1388_s21 = smov 0  }
   0x5   :  { %s1390_s22 = smov 0   ;;  %s1392_s23 = smov 0  }
   0x6 LB: > { %s942_s24 = sadd.s32 4294967295, %s1340_s23   ;;  %s943_s25 = sadd.s32 4294967294, %s1340_s23   ;;  %s1340_s23 = sphi %s1392_s23, %s20_s23   ;;  %s1336_s22 = sphi %s1390_s22, %s1625_s22   ;;  %s1332_s21 = sphi %s1388_s21, %s1624_s21   ;;  %s1328_s20 = sphi %s1386_s20, %s1623_s20   ;;  %s1324_s19 = sphi %s1384_s19, %s1622_s19   ;;  %s1320_s18 = sphi %s1382_s18, %s1621_s18  }
   0x7   : > { %s32_s26 = sadd.s32 1, %s1336_s22  ;;  %s151_s27 = sadd.s32 1, %s1328_s20 }
   0x8   : > { %p34_p0 = scmp.ge.s32.totalorder %s32_s26, 2  ;;  %p161_p1 = scmp.ne.s32.totalorder %s1328_s20, %s1324_s19 }
   0x9   : > { %p162_p2 = scmp.eq.s32.totalorder %s942_s24, 1  ;;  %p167_p3 = scmp.ne.s32.totalorder %s1324_s19, %s1320_s18 }
   0xa   : > { %s1627_s26 = smov (%p34_p0, %s32_s26), 0  ;;  %p168_p5 = scmp.eq.s32.totalorder %s943_s25, 1 }
   0xb   : > { %1610 = sst [smem:[#allocation12_spill]] %s1627_s26  ;;  %p1422_p4 = por %p162_p2, %p161_p1 }
   0xc   : > { %s146_s29 = ssub.s32 %s1336_s22, %s1627_s26  ;;  %p944_p6 = scmp.ge.s32.totalorder %s1340_s23, 1 }
   0xd   : > { %s1611_s28 = scalar_select %p1422_p4, 1, 0 }
   0xe   : > { %p149_p7 = scmp.eq.s32.totalorder %s146_s29, 0  ;;  %p1429_p8 = por %p168_p5, %p167_p3 }
   0xf   : > { %p175_p9 = scmp.lt.s32.totalorder %s1340_s23, 3  ;;  %p1441_p11 = scmp.eq.s32.totalorder %s942_s24, 0 }
  0x10   : > { %s1612_s30 = scalar_select %p1429_p8, 1, 0 }
  0x11   : > { %s1435_s6 = scalar_select %p149_p7, %s1328_s20, %s151_s27  }
  0x12   : > { %p1437_p10 = pnand %p944_p6, %p175_p9  ;;  %s1342_s9 = smov [#allocation3]  }
  0x13   : > { %s1614_s8 = scalar_select %p1441_p11, 1, 0 }
  0x14   : > { %s1613_s7 = scalar_select %p1437_p10, 1, 0 }
  0x15   : > { %p1085_p12 = pneg %p1437_p10  ;;  %s187_s10 = sshll.u32 %s1342_s9, 4  ;;  %s188_s10 = int_to_ptr.vmem [resolvable:$true] %s187_s10 }
  0x16   : > { %s1343_s12 = smov [#allocation6]   ;;  %s1198_s16 = scalar_lea.hbm %s1600_s1, 1536 }
  0x17   : > { %p1449_p13 = pnand %p1441_p11, %p1085_p12  ;;  %s203_s13 = sshll.u32 %s1343_s12, 4  ;;  %s1453_s13 = int_to_ptr.vmem [resolvable:$true] %s203_s13 }
  0x18   : > { %p1199_p0 = scmp.ne.s32.totalorder %s1600_s1, %s1198_s16  ;;  %p1205_p5 = scmp.lt.u32.totalorder %s1198_s16, %s1600_s1 }
  0x19   : > { %p1200_p1 = pneg %p1449_p13 }
  0x1b   : > { %p1201_p2 = pnand %p1200_p1, %p1199_p0 }
  0x1d   : > { %p1202_p3 = pneg %p1201_p2 }
  0x1f   : > { %p1207_p6 = pnand %p1205_p5, %p1202_p3 }
  0x21   : > { %1210 = shalt.err (!%p1207_p6)
}
  0x22   : > { %s1211_s29 = scalar_lea.vmem %s188_s10, 1536  ;;  %p1219_p8 = scmp.lt.s32.totalorder %s188_s10, %s188_s10 }
  0x23   : > { %p1212_p7 = scmp.ne.s32.totalorder %s188_s10, %s1211_s29  ;;  %p1220_p4 = scmp.lt.s32.totalorder %s1211_s29, %s1211_s29 }
  0x25   : > { %p1214_p9 = pnand %p1212_p7, %p1200_p1  ;;  %p1221_p11 = por %p1220_p4, %p1219_p8 }
  0x27   : > { %p1215_p12 = pneg %p1214_p9 }
  0x29   : > { %p1222_p10 = pnand %p1221_p11, %p1215_p12 }
  0x2b   : > { %1225 = shalt.err (!%p1222_p10)
}
  0x2c   : > { %s1344_s9 = smov 64   ;;  %s1345_s12 = smov 4  }
  0x2d   : > { %1088 = dma.hbm_to_vmem [thread:$0]  (!%p1449_p13), %s1600_s1, 1536, %s188_s10, [#allocation4], %s1344_s9, %s1344_s9, %s1345_s12  }
  0x2e   : > { %s1226_s24 = scalar_lea.hbm %s1602_s3, 3072 }
  0x2f   : > { %p1227_p0 = scmp.ne.s32.totalorder %s1602_s3, %s1226_s24  ;;  %p1233_p10 = scmp.lt.u32.totalorder %s1226_s24, %s1602_s3 }
  0x31   : > { %p1229_p4 = pnand %p1227_p0, %p1200_p1 }
  0x33   : > { %p1230_p8 = pneg %p1229_p4 }
  0x35   : > { %p1235_p11 = pnand %p1233_p10, %p1230_p8 }
  0x37   : > { %1238 = shalt.err (!%p1235_p11)
}
  0x38   : > { %s1239_s10 = scalar_lea.vmem %s1453_s13, 3072  ;;  %p1247_p6 = scmp.lt.s32.totalorder %s1453_s13, %s1453_s13 }
  0x39   : > { %p1240_p2 = scmp.ne.s32.totalorder %s1453_s13, %s1239_s10  ;;  %p1248_p7 = scmp.lt.s32.totalorder %s1239_s10, %s1239_s10 }
  0x3b   : > { %p1242_p3 = pnand %p1240_p2, %p1200_p1  ;;  %p1249_p9 = por %p1248_p7, %p1247_p6 }
  0x3d   : > { %p1243_p5 = pneg %p1242_p3 }
  0x3f   : > { %p1250_p12 = pnand %p1249_p9, %p1243_p5 }
  0x41   : > { %1253 = shalt.err (!%p1250_p12)
}
  0x42   : > { %1091 = dma.hbm_to_vmem [thread:$0]  (!%p1449_p13), %s1602_s3, 3072, %s1453_s13, [#allocation7], %s1344_s9, %s1344_s9, %s1345_s12  }
  0x43   : > { %p1616_p0 = scmp.ne.s32.totalorder %s1613_s7, 0 }
  0x44   : > { %p1617_p4 = scmp.ne.s32.totalorder (!%p1616_p0), %s1614_s8, 0 }
  0x45   : > { %230 = sbr.rel (%p1616_p0) target bundleno = 726 (0x2d6), region = 40 }
  0x4c   : > { %1307 = dma.done.wait (%p1617_p4), [#allocation4], 1536  }
  0x4d   : > { %1309 = vsyncadd (%p1617_p4), [#allocation4], 4294965760 }
  0x4e   : > { %1311 = dma.done.wait (%p1617_p4), [#allocation7], 3072  }
  0x4f   : > { %1313 = vsyncadd (%p1617_p4), [#allocation7], 4294964224  ;;  %p262_p1 = scmp.lt.s32.totalorder %s1332_s21, 1  ;;  %v1346_v0 = vmov 0   ;;  %vm285_vm0 = vsmask.f32 7424 }
  0x50   : > { %425 = vmatprep.subr.bf16.mxu0 %v1346_v0  ;;  %v1160_v3 = vld [vmem:[#allocation3] sm:$0xff]   ;;  %v1161_v7 = vld [vmem:[#allocation3 + $0x8] sm:$0xff]   ;;  %vm305_vm1 = vcmask 1046528   ;;  %vm309_vm2 = vcmask 523264   ;;  %v1162_v14 = vld [vmem:[#allocation3 + $0x10] sm:$0xff]   ;;  %s1347_s8 = smov 64  }
  0x51   : > { %s263_s11 = scalar_select %p262_p1, %s1332_s21, 1  ;;  %426 = vmatpush1.bf16.msra.mxu0 %v1160_v3  ;;  %v1163_v18 = vld [vmem:[#allocation3 + $0x18] sm:$0xff]   ;;  %v1164_v19 = vld [vmem:[#allocation3 + $0x20] sm:$0xff]   ;;  %v1165_v20 = vld [vmem:[#allocation3 + $0x28] sm:$0xff]   ;;  %v1348_v47 = vmov 0.0   ;;  %vm496_vm3 = vcmask 1040384  }
  0x52   : > { %427 = vmatprep.subr.bf16.mxu0 %v1346_v0  ;;  %v1166_v21 = vld [vmem:[#allocation3 + $0x30] sm:$0xff]   ;;  %v1167_v22 = vld [vmem:[#allocation3 + $0x38] sm:$0xff]   ;;  %v1168_v23 = vld [vmem:[#allocation3 + $0x40] sm:$0xff]   ;;  %vm497_vm4 = vsmask.f32 256  ;;  %vm1349_vm8 = vmmov 0  }
  0x53   : > { %s1074_s7 = smul.u32 12, %s263_s11  ;;  %v1169_v24 = vld [vmem:[#allocation3 + $0x48] sm:$0xff]   ;;  %v1170_v25 = vld [vmem:[#allocation3 + $0x50] sm:$0xff]   ;;  %v1171_v26 = vld [vmem:[#allocation3 + $0x58] sm:$0xff]   ;;  %vm502_vm6 = vsmask.f32 7938 }
  0x54   : > { %v1172_v31 = vld [vmem:[#allocation6 + $0x40] sm:$0xff]   ;;  %v1174_v33 = vld [vmem:[#allocation6 + $0x48] sm:$0xff]   ;;  %v1176_v35 = vld [vmem:[#allocation6 + $0x50] sm:$0xff]   ;;  %s259_s17 = sand.u32 1, %s1324_s19   ;;  %s1012_s26 = sshll.u32 %s1332_s21, 7 }
  0x55   : > { %s266_s12 = scalar_lea.vmem %s1599_s0, %s1074_s7  ;;  %428 = vmatpush1.bf16.msra.mxu0 %v1161_v7  ;;  %v1173_v32 = vld [vmem:[#allocation6] sm:$0xff]   ;;  %1023 = vmatprep.subr.bf16.mxu1 %v1172_v31  ;;  %v1175_v34 = vld [vmem:[#allocation6 + $0x8] sm:$0xff]   ;;  %v1177_v36 = vld [vmem:[#allocation6 + $0x10] sm:$0xff]   ;;  %s951_s27 = sshll.u32 %s259_s17, 3 }
  0x56   : > { %v1158_v1 = vld [vmem:[%s266_s12] sm:$0xff]   ;;  %v1159_v2 = vld [vmem:[%s266_s12 + $0x8] ss:$0 sps:$4 sm:$0x33]   ;;  %429 = vmatprep.subr.bf16.mxu0 %v1346_v0  ;;  %1024 = vmatpush3.bf16.msra.mxu1 %v1173_v32  ;;  %v1180_v39 = vld [vmem:[#allocation6 + $0x60] sm:$0xff]   ;;  %s261_s29 = scalar_lea.vmem [#allocation8], %s951_s27  ;;  %s1549_s7 = scalar_lea.hbm %s1604_s5, %s1012_s26 }
  0x57   : > { %v287_v4 = vshrl.u32 %v1158_v1, 16  ;;  %v289_v5 = vshll.u32 %v1158_v1, 16  ;;  %v294_v6 = vshll.u32 %v1159_v2, 16  ;;  %v298_v10 = vshrl.u32 %v1159_v2, 16  ;;  %1025 = vmatprep.subr.bf16.mxu1 %v1174_v33  ;;  %v1178_v37 = vld [vmem:[#allocation6 + $0x58] sm:$0xff]   ;;  %v1181_v40 = vld [vmem:[#allocation6 + $0x20] sm:$0xff]   ;;  %vm498_vm5 = vmand %vm496_vm3, %vm497_vm4 }
  0x58   : > { %v306_v11 = vrot.slane %v1158_v1, 1  ;;  %v307_v13 = vrot.slane %v1159_v2, 1  ;;  %v1179_v38 = vld [vmem:[#allocation6 + $0x18] sm:$0xff]   ;;  %v1182_v41 = vld [vmem:[#allocation6 + $0x68] sm:$0xff]   ;;  %v1184_v43 = vld [vmem:[#allocation6 + $0x70] sm:$0xff]   ;;  %s845_s10 = sshll.u32 %s261_s29, 4  ;;  %s1544_s10 = int_to_ptr.vmem [resolvable:$true] %s845_s10 }
  0x59   : > { %v291_v8 = vrot.slane %v289_v5, 1  ;;  %v296_v9 = vrot.slane %v294_v6, 1  ;;  %430 = vmatpush1.bf16.msra.mxu0 %v1162_v14  ;;  %v1183_v42 = vld [vmem:[#allocation6 + $0x28] sm:$0xff]   ;;  %v1185_v44 = vld [vmem:[#allocation6 + $0x30] sm:$0xff]   ;;  %v1186_v45 = vld [vmem:[#allocation6 + $0x78] sm:$0xff]   ;;  %s1551_s13 = scalar_lea.sflag [#allocation5], %s259_s17 }
  0x5a   : > { %v308_v16 = vsel %vm305_vm1, %v306_v11, %v307_v13  ;;  %431 = vmatprep.subr.bf16.mxu0 %v1346_v0  ;;  %1026 = vmatpush3.bf16.msra.mxu1 %v1175_v34  ;;  %v1187_v46 = vld [vmem:[#allocation6 + $0x38] sm:$0xff]   ;;  %v955_v48 = vld [vmem:[%s1601_s2] ss:$0 sm:$0xff]  ;;  %vm503_vm7 = vmand %vm496_vm3, %vm502_vm6  ;;  %s1254_s9 = scalar_lea.vmem %s1544_s10, 128  ;;  %p1618_p8 = scmp.ne.s32.totalorder %s1611_s28, 0 }
  0x5b   : > { %v292_v12 = vor.u32 %v291_v8, %v287_v4  ;;  %v300_v17 = vor.u32 %v298_v10, %v296_v9  ;;  %968 = vmatprep.mubr.msk.bf16.mxu0 %vm309_vm2, %v308_v16  ;;  %1027 = vmatprep.subr.bf16.mxu1 %v1176_v35  ;;  %v1192_v16 = vld [vmem:[#allocation6 + $0x90] sm:$0xff]   ;;  %p1255_p13 = scmp.ne.s32.totalorder %s1544_s10, %s1254_s9  ;;  %s1350_s21 = smov [#allocation8]  }
  0x5c   : > { %v975_v31 = vld [vmem:[%s1603_s4] ss:$0 sm:$0xff]  ;;  %s1258_s12 = sshll.u32 %s1350_s21, 4  ;;  %s1259_s12 = int_to_ptr.vmem [resolvable:$false] %s1258_s12 }
  0x5d   : > { %v297_v15 = vsel %vm285_vm0, %v292_v12, %v296_v9  ;;  %432 = vmatpush1.bf16.msra.mxu0 %v1163_v18  ;;  %v1194_v18 = vld [vmem:[#allocation6 + $0xa0] sm:$0xff]   ;;  %p1256_p10 = pnand %p1255_p13, %p1618_p8  ;;  %s1260_s15 = scalar_lea.vmem %s1259_s12, 256 }
  0x5e   : > { %301 = vrot.lane.b32.xlu0 %v297_v15, %s1347_s8  ;;  %433 = vmatprep.subr.bf16.mxu0 %v1346_v0  ;;  %v1191_v15 = vld [vmem:[#allocation6 + $0x88] sm:$0xff]   ;;  %p1261_p2 = scmp.lt.s32.totalorder %s1544_s10, %s1259_s12  ;;  %p1262_p3 = scmp.lt.s32.totalorder %s1260_s15, %s1254_s9 }
  0x5f   : > { %1028 = vmatpush3.bf16.msra.mxu1 %v1177_v36  ;;  %p1257_p11 = pneg %p1256_p10 }
  0x60   : > { %1029 = vmatprep.subr.bf16.mxu1 %v1178_v37  ;;  %p1263_p5 = por %p1262_p3, %p1261_p2 }
  0x61   : > { %434 = vmatpush1.bf16.msra.mxu0 %v1164_v19  ;;  %v1195_v19 = vld [vmem:[#allocation6 + $0xa8] sm:$0xff]  }
  0x62   : > { %303 = vrot.lane.b32.xlu0 %v300_v17, %s1347_s8  ;;  %435 = vmatprep.subr.bf16.mxu0 %v1346_v0  ;;  %v1193_v17 = vld [vmem:[#allocation6 + $0x98] sm:$0xff]   ;;  %p1264_p6 = pnand %p1263_p5, %p1257_p11 }
  0x63   : > { %1030 = vmatpush3.bf16.msra.mxu1 %v1179_v38 }
  0x64   : > { %1031 = vmatprep.subr.bf16.mxu1 %v1180_v39 }
  0x65   : > { %436 = vmatpush1.bf16.msra.mxu0 %v1165_v20  ;;  %v1196_v20 = vld [vmem:[#allocation6 + $0xb0] sm:$0xff]  }
  0x66   : > { %437 = vmatprep.subr.bf16.mxu0 %v1346_v0 }
  0x67   : > { %1032 = vmatpush3.bf16.msra.mxu1 %v1181_v40 }
  0x68   : > { %1033 = vmatprep.subr.bf16.mxu1 %v1182_v41 }
  0x69   : > { %438 = vmatpush1.bf16.msra.mxu0 %v1166_v21  ;;  %v1197_v21 = vld [vmem:[#allocation6 + $0xb8] sm:$0xff]  }
  0x6a   : > { %439 = vmatprep.subr.bf16.mxu0 %v1346_v0 }
  0x6b   : > { %1034 = vmatpush3.bf16.msra.mxu1 %v1183_v42 }
  0x6c   : > { %1035 = vmatprep.subr.bf16.mxu1 %v1184_v43 }
  0x6d   : > { %440 = vmatpush1.bf16.msra.mxu0 %v1167_v22 }
  0x6e   : > { %441 = vmatprep.subr.bf16.mxu0 %v1346_v0 }
  0x6f   : > { %1036 = vmatpush3.bf16.msra.mxu1 %v1185_v44 }
  0x70   : > { %1037 = vmatprep.subr.bf16.mxu1 %v1186_v45 }
  0x71   : > { %442 = vmatpush1.bf16.msra.mxu0 %v1168_v23 }
  0x72   : > { %443 = vmatprep.subr.bf16.mxu0 %v1346_v0 }
  0x73   : > { %1038 = vmatpush3.bf16.msra.mxu1 %v1187_v46 }
  0x74   : > { %1054 = vmatprep.subr.bf16.mxu1 %v1348_v47 }
  0x75   : > { %444 = vmatpush1.bf16.msra.mxu0 %v1169_v24 }
  0x76   : > { %445 = vmatprep.subr.bf16.mxu0 %v1346_v0 }
  0x79   : > { %446 = vmatpush1.bf16.msra.mxu0 %v1170_v25 }
  0x7a   : > { %447 = vmatprep.subr.bf16.mxu0 %v1346_v0 }
  0x7d   : > { %448 = vmatpush1.bf16.msra.mxu0 %v1171_v26 }
  0xd0   : > { %v302_v27 = vpop.permute.xlu0 %301 }
  0xd1   : > { %v311_v28 = vsel %vm309_vm2, %v1158_v1, %v302_v27 }
  0xd2   : > { %458 = vmatmul.mubr.bf16.vlgmr.msra.gmra.mrb[0].mxu0 %v311_v28 }
  0xd3   : > { %969 = vmatprep.mubr.msk.bf16.mxu0 %vm309_vm2, %v307_v13  ;;  %v1190_v13 = vld [vmem:[#allocation6 + $0x80] sm:$0xff]  }
  0xd4   : > { %v304_v29 = vpop.permute.xlu0 %303 }
  0xd5   : > { %v314_v30 = vsel %vm309_vm2, %v1159_v2, %v304_v29 }
  0xda   : > { %466 = vmatmul.mubr.bf16.gmra.mrb[4].mxu0 %v314_v30 }
 0x1a5   : > { %v459_v49 = vpop.f32.mrb[0].mxu0 }
 0x1a6   : > { %v460_v50 = vadd.f32 %v955_v48, %v459_v49  ;;  %v461_v51 = vpop.f32.mrb[1].mxu0 }
 0x1a7   : > { %v462_v52 = vpop.f32.mrb[2].mxu0 }
 0x1a8   : > { %v463_v53 = vadd.f32 %v955_v48, %v462_v52  ;;  %v464_v54 = vpop.f32.mrb[3].mxu0  ;;  %v473_v55 = vmax.f32 %v460_v50, 0.0 }
 0x1aa   : > { %v474_v56 = vmax.f32 %v463_v53, 0.0 }
 0x1ac   : > { %v1016_v57 = vpack.c.bf16 %v474_v56, %v473_v55 }
 0x1ad   : > { %v467_v58 = vpop.f32.mrb[4].mxu0 }
 0x1ae   : > { %1017 = vst [vmem:[#allocation2] sm:$0xff] %v1016_v57   ;;  %v468_v59 = vadd.f32 %v955_v48, %v467_v58  ;;  %v469_v60 = vpop.f32.mrb[5].mxu0 }
 0x1af   : > { %v470_v61 = vpop.f32.mrb[6].mxu0 }
 0x1b0   : > { %v475_v62 = vmax.f32 %v468_v59, 0.0  ;;  %v471_v63 = vpop.f32.mrb[7].mxu0 }
 0x1b2   : > { %v1009_v0 = vpack.c.bf16 %v475_v62, %v475_v62 }
 0x1b4   : > { %491 = vst [vmem:[#allocation2 + $0x8] sm:$0x1] %v1009_v0 }
 0x1b5   : > { %v499_v1 = vld [vmem:[#allocation2] sm:$0x1] }
 0x1b6   : > { %v500_v2 = vsel %vm498_vm5, 0, %v499_v1 }
 0x1b7   : > { %501 = vst [vmem:[#allocation2] sm:$0x1] %v500_v2 }
 0x1bb   : > { %v504_v3 = vld [vmem:[#allocation2 + $0x8] sm:$0x1] }
 0x1bc   : > { %v505_v4 = vsel %vm503_vm7, 0, %v504_v3 }
 0x1bd   : > { %506 = vst [vmem:[#allocation2 + $0x8] sm:$0x1] %v505_v4 }
 0x1be   : > { %v1188_v5 = vld [vmem:[#allocation2] sm:$0xff]  }
 0x1bf   : > { %v522_v6 = vshll.u32 %v1188_v5, 16  ;;  %v520_v9 = vshrl.u32 %v1188_v5, 16  ;;  %v532_v23 = vrot.slane %v1188_v5, 1 }
 0x1c1   : > { %v524_v8 = vrot.slane %v522_v6, 1 }
 0x1c3   : > { %v525_v11 = vor.u32 %v524_v8, %v520_v9 }
 0x1c4   : > { %v1189_v7 = vld [vmem:[#allocation2 + $0x8] ss:$0 sps:$4 sm:$0x11]  }
 0x1c5   : > { %v527_v10 = vshll.u32 %v1189_v7, 16  ;;  %v533_v22 = vrot.slane %v1189_v7, 1 }
 0x1c7   : > { %v529_v12 = vrot.slane %v527_v10, 1  ;;  %v534_v24 = vsel %vm305_vm1, %v532_v23, %v533_v22 }
 0x1c9   : > { %v530_v14 = vsel %vm285_vm0, %v525_v11, %v529_v12 }
 0x1ca   : > { %767 = vmatprep.mubr.bf16.mxu1 %v530_v14 }
 0x1cb   : > { %768 = vmatmul.mubr.bf16.vlgmr.msra.gmra.mrb[0].mxu1 %v1188_v5 }
 0x1cc   : > { %1055 = vmatpush3.bf16.msra.mxu1 %v1190_v13  ;;  %1070 = vmatprep.mubr.msk.bf16.mxu1 %vm1349_vm8, %v1348_v47 }
 0x1cd   : > { %1056 = vmatprep.subr.bf16.mxu1 %v1348_v47 }
 0x1d0   : > { %1057 = vmatpush3.bf16.msra.mxu1 %v1191_v15 }
 0x1d1   : > { %1058 = vmatprep.subr.bf16.mxu1 %v1348_v47 }
 0x1d4   : > { %1059 = vmatpush3.bf16.msra.mxu1 %v1192_v16 }
 0x1d5   : > { %1060 = vmatprep.subr.bf16.mxu1 %v1348_v47 }
 0x1d8   : > { %1061 = vmatpush3.bf16.msra.mxu1 %v1193_v17 }
 0x1d9   : > { %1062 = vmatprep.subr.bf16.mxu1 %v1348_v47 }
 0x1dc   : > { %1063 = vmatpush3.bf16.msra.mxu1 %v1194_v18 }
 0x1dd   : > { %1064 = vmatprep.subr.bf16.mxu1 %v1348_v47 }
 0x1e0   : > { %1065 = vmatpush3.bf16.msra.mxu1 %v1195_v19 }
 0x1e1   : > { %1066 = vmatprep.subr.bf16.mxu1 %v1348_v47 }
 0x1e4   : > { %1067 = vmatpush3.bf16.msra.mxu1 %v1196_v20 }
 0x1e5   : > { %1068 = vmatprep.subr.bf16.mxu1 %v1348_v47 }
 0x1e8   : > { %1069 = vmatpush3.bf16.msra.mxu1 %v1197_v21 }
 0x1eb   : > { %1071 = vmatmul.mubr.bf16.vlgmr.msra.gmra.mrb[4].mxu1 %v534_v24 }
 0x29e   : > { %v1039_v25 = vpop.f32.mrb[0].mxu1 }
 0x29f   : > { %v1040_v26 = vpop.f32.mrb[1].mxu1 }
 0x2a0   : > { %v1041_v27 = vadd.f32 %v1040_v26, %v1039_v25  ;;  %v1042_v28 = vpop.f32.mrb[2].mxu1 }
 0x2a1   : > { %v1043_v29 = vpop.f32.mrb[3].mxu1 }
 0x2a2   : > { %v1044_v30 = vadd.f32 %v1043_v29, %v1042_v28  ;;  %v770_v32 = vadd.f32 %v1041_v27, %v975_v31 }
 0x2a4   : > { %v773_v36 = vadd.f32 %v1044_v30, %v975_v31 }
 0x2be   : > { %v810_v33 = vpop.f32.mrb[4].mxu1 }
 0x2bf   : > { %v811_v34 = vadd.f32 %v810_v33, %v770_v32  ;;  %v1072_v35 = vpop.f32.mrb[5].mxu1 }
 0x2c0   : > { %v813_v37 = vpop.f32.mrb[6].mxu1 }
 0x2c1   : > { %v814_v38 = vadd.f32 %v813_v37, %v773_v36  ;;  %v1073_v39 = vpop.f32.mrb[7].mxu1  ;;  %v817_v40 = vmax.f32 %v811_v34, 0.0 }
 0x2c3   : > { %v818_v41 = vmax.f32 %v814_v38, 0.0 }
 0x2c5   : > { %v1021_v42 = vpack.c.bf16 %v818_v41, %v817_v40 }
 0x2c7   : > { %1022 = vst [vmem:[%s261_s29] sm:$0xff] %v1021_v42  }
 0x2c8   : > { %1267 = shalt.err (!%p1264_p6)
}
 0x2c9   : > { %s1268_s16 = scalar_lea.hbm %s1549_s7, 128  ;;  %s1272_s25 = scalar_lea.hbm %s1604_s5, 256 }
 0x2ca   : > { %p1269_p7 = scmp.ne.s32.totalorder %s1549_s7, %s1268_s16  ;;  %p1273_p0 = scmp.lt.u32.totalorder %s1549_s7, %s1604_s5 }
 0x2cb   : > { %p1274_p4 = scmp.lt.u32.totalorder %s1272_s25, %s1268_s16  ;;  %p1276_p13 = scmp.lt.u32.totalorder %s1268_s16, %s1549_s7 }
 0x2cc   : > { %p1270_p9 = pnand %p1269_p7, %p1618_p8 }
 0x2cd   : > { %p1275_p1 = por %p1274_p4, %p1273_p0 }
 0x2ce   : > { %p1271_p12 = pneg %p1270_p9 }
 0x2cf   : > { %p1277_p10 = por %p1276_p13, %p1275_p1 }
 0x2d1   : > { %p1278_p11 = pnand %p1277_p10, %p1271_p12 }
 0x2d3   : > { %1281 = shalt.err (!%p1278_p11)
}
 0x2d4   : > { %s1351_s26 = smov 4  }
 0x2d5   : > { %1083 = dma.vmem_to_hbm [thread:$0]  (%p1618_p8), %s1544_s10, 128, %s1549_s7, %s1551_s13, %s1347_s8, %s1347_s8, %s1351_s26  }
 0x2d6 PF: > { %p1100_p2 = scmp.ge.s32.totalorder %s1340_s23, 2  ;;  %s860_s14 = sand.u32 1, %s1320_s18  }
 0x2d7   : > { %p1619_p3 = scmp.ne.s32.totalorder %s1612_s30, 0  ;;  %s861_s11 = scalar_lea.sflag [#allocation5], %s860_s14 }
 0x2d9   : > { %p1093_p5 = pnand %p1100_p2, %p1619_p3 }
 0x2db   : > { %1315 = dma.done.wait (!%p1093_p5), %s861_s11, 128  }
 0x2dc   : > { %1317 = vsyncadd (!%p1093_p5), %s861_s11, 4294967168  ;;  %s20_s23 = sadd.s32 1, %s1340_s23   ;;  %s1620_s28 = sld [smem:[#allocation12_spill]] }
 0x2dd   : > { %p17_p6 = scmp.ge.s32.totalorder %s20_s23, 4   ;;  %s1621_s18 = smov %s1324_s19 }
 0x2de   : > { %s1622_s19 = smov %s1328_s20  ;;  %s1623_s20 = smov %s1435_s6 }
 0x2df   : > { %s1624_s21 = smov %s1336_s22  ;;  %19 = sbr.rel (!%p17_p6) target bundleno = 6 (0x6), region = 89 }
 0x2e2   : > { %s1625_s22 = smov %s1620_s28 }
 0x2e6   :  { %866 = vsyncpa [#allocation4], 1 }
 0x2e7   :  { %868 = vsyncpa [#allocation4 + $0x1], 1 }
 0x2e8   :  { %869 = vsyncpa [#allocation7], 1 }
 0x2e9   :  { %870 = vsyncpa [#allocation5], 1 }
 0x2ea   :  { %872 = vsyncpa [#allocation5 + $0x1], 1 }

</bundles_post_ra>
